<compile_context>
chip_gen: v7x
topology: tpu7x:2x2x1
jax: 0.10.0
libtpu: 0.0.40
codegen_flags: <defaults>
</compile_context>

<pallas_src>
import jax
import jax.numpy as jnp
from jax.experimental import pallas as pl
from jax.experimental.pallas import tpu as pltpu


def _round_up(x, m):
    return ((x + m - 1) // m) * m


def speakernet_kernel(x_ref, w1_ref, b1_ref, w2_ref, b2_ref, o_ref):
    # Fused: out = relu(x @ W1 + b1) @ W2 + b2
    # x is cast to bf16 in-kernel (MXU full-rate on v5e/v6e/v7x); accumulation
    # and the bias-add / ReLU stay in f32 (v5e has no bf16 VPU).
    x = x_ref[...].astype(jnp.bfloat16)
    h = jnp.dot(x, w1_ref[...], preferred_element_type=jnp.float32)
    h = h + b1_ref[...]                      # (TN, H) + (1, H) broadcast, f32
    h = jnp.maximum(h, 0.0)
    h = h.astype(w2_ref.dtype)               # back to bf16 for the MXU
    o = jnp.dot(h, w2_ref[...], preferred_element_type=jnp.float32)
    o = o + b2_ref[...]                      # (TN, E) + (1, E) broadcast, f32
    o_ref[...] = o.astype(o_ref.dtype)


def speakernet_forward(data, params, *, tile_n=1024, out_dtype=None):
    """Mirrors SpeakerNet.forward(data, label=None).

    data: any shape (..., in_feat)  -> reshaped to (-1, in_feat)
    returns: (N, emb_dim) embeddings (dtype `out_dtype`, default data.dtype)
    """
    w1, b1, w2, b2 = params
    in_feat = data.shape[-1]
    x = data.reshape(-1, in_feat)            # data.reshape(-1, data.size()[-1])
    n = x.shape[0]
    hid = w1.shape[1]
    emb = w2.shape[1]
    if out_dtype is None:
        out_dtype = data.dtype

    # Weights as bf16 MXU operands (tiny, reused across all tiles); biases in
    # f32 for the VPU.  x is left in its original dtype: the bf16 cast happens
    # in-kernel, so there is no extra HBM pass over the input.
    w1_bf = w1.astype(jnp.bfloat16)
    w2_bf = w2.astype(jnp.bfloat16)
    b1_f = b1.reshape(1, hid).astype(jnp.float32)
    b2_f = b2.reshape(1, emb).astype(jnp.float32)

    # Row tile: big (amortize ~0.35us per grid step), multiple of 16 (legal
    # for bf16 sublane packing too), capped at 2048.  No padding: Pallas masks
    # the ragged last block.  For tiny N use a full-extent block.
    tn = min(_round_up(max(int(tile_n), 16), 16), 2048)
    if n < 16:
        tn = max(n, 1)                       # full-extent block, single step
    else:
        if n >= 32:
            # Keep >= 2 grid steps so both v7x TensorCores get work.
            tn = min(tn, _round_up(pl.cdiv(n, 2), 16))
        tn = min(tn, _round_up(n, 16))
    grid = (pl.cdiv(n, tn),)

    x_b = x.dtype.itemsize
    o_b = jnp.dtype(out_dtype).itemsize

    # VMEM budget (bytes): double-buffered x & out tiles, (double-buffered)
    # resident weights, and the f32 intermediates.  Generous headroom, capped
    # well under v7x's 64 MiB physical VMEM.
    bytes_x = 2 * tn * in_feat * x_b
    bytes_o = 2 * tn * emb * o_b
    bytes_w = 2 * ((in_feat * hid + hid * emb) * 2 + (hid + emb) * 4)
    bytes_h = tn * hid * 4 + tn * max(hid, emb) * 4
    vmem_limit = min(max(2 * (bytes_x + bytes_o + bytes_w + bytes_h),
                         16 * 1024 * 1024), 48 * 1024 * 1024)

    cost = pl.CostEstimate(
        flops=2 * n * (in_feat * hid + hid * emb),
        transcendentals=0,
        bytes_accessed=(n * in_feat * x_b + n * emb * o_b
                        + (in_feat * hid + hid * emb) * 2
                        + (hid + emb) * 4),
    )

    out = pl.pallas_call(
        speakernet_kernel,
        out_shape=jax.ShapeDtypeStruct((n, emb), out_dtype),
        grid=grid,
        in_specs=[
            pl.BlockSpec((tn, in_feat), lambda i: (i, 0)),    # x: tiled rows
            pl.BlockSpec((in_feat, hid), lambda i: (0, 0)),   # W1: resident
            pl.BlockSpec((1, hid), lambda i: (0, 0)),         # b1: resident
            pl.BlockSpec((hid, emb), lambda i: (0, 0)),       # W2: resident
            pl.BlockSpec((1, emb), lambda i: (0, 0)),         # b2: resident
        ],
        out_specs=pl.BlockSpec((tn, emb), lambda i: (i, 0)),
        compiler_params=pltpu.CompilerParams(
            dimension_semantics=("parallel",),
            vmem_limit_bytes=int(vmem_limit)),
        cost_estimate=cost,
    )(x, w1_bf, b1_f, w2_bf, b2_f)

    return out


def init_params(key, in_feat, hidden, emb, dtype=jnp.float32):
    k1, k2, k3, k4 = jax.random.split(key, 4)
    w1 = jax.random.normal(k1, (in_feat, hidden), dtype) * 0.05
    b1 = jax.random.normal(k2, (1, hidden), dtype) * 0.01
    w2 = jax.random.normal(k3, (hidden, emb), dtype) * 0.05
    b2 = jax.random.normal(k4, (1, emb), dtype) * 0.01
    return (w1, b1, w2, b2)


def _reference(data, params):
    # Pure-JAX reference with the same bf16 rounding of MXU operands.
    w1, b1, w2, b2 = params
    x = data.reshape(-1, data.shape[-1])
    xb = x.astype(jnp.bfloat16).astype(jnp.float32)
    w1b = w1.astype(jnp.bfloat16).astype(jnp.float32)
    w2b = w2.astype(jnp.bfloat16).astype(jnp.float32)
    h = jnp.maximum(xb @ w1b + b1.reshape(1, -1), 0.0)
    h = h.astype(jnp.bfloat16).astype(jnp.float32)
    return h @ w2b + b2.reshape(1, -1)


if __name__ == "__main__":
    key = jax.random.PRNGKey(0)
    kp, kd, kd2 = jax.random.split(key, 3)

    # Small, lane/MXU-friendly shapes consistent with SpeakerNet.forward:
    # data: (batch=2, nPerSpeaker=2, feat=128) -> reshape(-1, 128) -> (4, 128)
    batch, n_per_speaker, in_feat = 2, 2, 128
    hidden, emb = 256, 256

    data = jax.random.normal(kd, (batch, n_per_speaker, in_feat), jnp.float32)
    params = init_params(kp, in_feat, hidden, emb)

    outp = speakernet_forward(data, params)
    outp = jax.block_until_ready(outp)
    ref = _reference(data, params)
    assert outp.shape == (batch * n_per_speaker, emb)
    assert jnp.allclose(outp, ref, atol=2e-2, rtol=2e-2)

    # Larger N to exercise the multi-step grid + ragged (masked) last block.
    data2 = jax.random.normal(kd2, (520, n_per_speaker, in_feat), jnp.float32)
    outp2 = jax.block_until_ready(speakernet_forward(data2, params))
    ref2 = _reference(data2, params)
    assert outp2.shape == (520 * n_per_speaker, emb)
    assert jnp.allclose(outp2, ref2, atol=2e-2, rtol=2e-2)

    print("KERNEL_OK")
</pallas_src>

<mosaic_0001>
module attributes {stable_mosaic.version = 11 : i64} {
  func.func @speakernet_kernel(%arg0: i32, %arg1: memref<4x128xf32, #tpu.memory_space<vmem>>, %arg2: memref<128x256xbf16, #tpu.memory_space<vmem>>, %arg3: memref<1x256xf32, #tpu.memory_space<vmem>>, %arg4: memref<256x256xbf16, #tpu.memory_space<vmem>>, %arg5: memref<1x256xf32, #tpu.memory_space<vmem>>, %arg6: memref<4x256xf32, #tpu.memory_space<vmem>>) attributes {dimension_semantics = [#tpu.dimension_semantics<parallel>], iteration_bounds = array<i64: 1>, scalar_prefetch = 0 : i64, scratch_operands = 0 : i64, tpu.core_type = #tpu.core_type<tc>, window_params = [{transform_indices = @transform_0, window_bounds = array<i64: 4, 128>}, {pipeline_mode = #tpu.pipeline_mode<synchronous>, transform_indices = @transform_1, window_bounds = array<i64: 128, 256>}, {pipeline_mode = #tpu.pipeline_mode<synchronous>, transform_indices = @transform_2, window_bounds = array<i64: 1, 256>}, {pipeline_mode = #tpu.pipeline_mode<synchronous>, transform_indices = @transform_3, window_bounds = array<i64: 256, 256>}, {pipeline_mode = #tpu.pipeline_mode<synchronous>, transform_indices = @transform_4, window_bounds = array<i64: 1, 256>}, {transform_indices = @transform_5, window_bounds = array<i64: 4, 256>}]} {
    %c0 = arith.constant 0 : index
    %c0_0 = arith.constant 0 : index
    %0 = vector.load %arg1[%c0, %c0_0] : memref<4x128xf32, #tpu.memory_space<vmem>>, vector<4x128xf32>
    %1 = arith.truncf %0 : vector<4x128xf32> to vector<4x128xbf16>
    %c0_1 = arith.constant 0 : index
    %c0_2 = arith.constant 0 : index
    %2 = vector.load %arg2[%c0_1, %c0_2] : memref<128x256xbf16, #tpu.memory_space<vmem>>, vector<128x256xbf16>
    %cst = arith.constant dense<0.000000e+00> : vector<4x256xf32>
    %3 = tpu.matmul %1, %2, %cst {dimension_numbers = #tpu.dot_dimension_numbers<[1], [0], [0], [1], [0, 0, 1, 1], [], []>} : vector<4x128xbf16>, vector<128x256xbf16>, vector<4x256xf32> -> vector<4x256xf32>
    %c0_3 = arith.constant 0 : index
    %c0_4 = arith.constant 0 : index
    %4 = vector.load %arg3[%c0_3, %c0_4] : memref<1x256xf32, #tpu.memory_space<vmem>>, vector<1x256xf32>
    %5 = vector.broadcast %4 : vector<1x256xf32> to vector<4x256xf32>
    %6 = arith.addf %3, %5 : vector<4x256xf32>
    %cst_5 = arith.constant 0.000000e+00 : f32
    %7 = vector.broadcast %cst_5 : f32 to vector<4x256xf32>
    %8 = arith.maximumf %6, %7 : vector<4x256xf32>
    %9 = arith.truncf %8 : vector<4x256xf32> to vector<4x256xbf16>
    %c0_6 = arith.constant 0 : index
    %c0_7 = arith.constant 0 : index
    %10 = vector.load %arg4[%c0_6, %c0_7] : memref<256x256xbf16, #tpu.memory_space<vmem>>, vector<256x256xbf16>
    %cst_8 = arith.constant dense<0.000000e+00> : vector<4x256xf32>
    %11 = tpu.matmul %9, %10, %cst_8 {dimension_numbers = #tpu.dot_dimension_numbers<[1], [0], [0], [1], [0, 0, 1, 1], [], []>} : vector<4x256xbf16>, vector<256x256xbf16>, vector<4x256xf32> -> vector<4x256xf32>
    %c0_9 = arith.constant 0 : index
    %c0_10 = arith.constant 0 : index
    %12 = vector.load %arg5[%c0_9, %c0_10] : memref<1x256xf32, #tpu.memory_space<vmem>>, vector<1x256xf32>
    %13 = vector.broadcast %12 : vector<1x256xf32> to vector<4x256xf32>
    %14 = arith.addf %11, %13 : vector<4x256xf32>
    %c0_11 = arith.constant 0 : index
    %c0_12 = arith.constant 0 : index
    %15 = vector.load %arg6[%c0_11, %c0_12] : memref<4x256xf32, #tpu.memory_space<vmem>>, vector<4x256xf32>
    tpu.vector_store %arg6[%c0_11, %c0_12], %14 {strides = array<i32>} : memref<4x256xf32, #tpu.memory_space<vmem>>, vector<4x256xf32>,
    return
  }
  func.func @transform_0(%arg0: i32) -> (i32, i32) {
    %c0_i32 = arith.constant 0 : i32
    %c0_i32_0 = arith.constant 0 : i32
    return %arg0, %c0_i32 : i32, i32
  }
  func.func @transform_1(%arg0: i32) -> (i32, i32) {
    %c0_i32 = arith.constant 0 : i32
    %c0_i32_0 = arith.constant 0 : i32
    %c0_i32_1 = arith.constant 0 : i32
    return %c0_i32, %c0_i32_0 : i32, i32
  }
  func.func @transform_2(%arg0: i32) -> (i32, i32) {
    %c0_i32 = arith.constant 0 : i32
    %c0_i32_0 = arith.constant 0 : i32
    %c0_i32_1 = arith.constant 0 : i32
    return %c0_i32, %c0_i32_0 : i32, i32
  }
  func.func @transform_3(%arg0: i32) -> (i32, i32) {
    %c0_i32 = arith.constant 0 : i32
    %c0_i32_0 = arith.constant 0 : i32
    %c0_i32_1 = arith.constant 0 : i32
    return %c0_i32, %c0_i32_0 : i32, i32
  }
  func.func @transform_4(%arg0: i32) -> (i32, i32) {
    %c0_i32 = arith.constant 0 : i32
    %c0_i32_0 = arith.constant 0 : i32
    %c0_i32_1 = arith.constant 0 : i32
    return %c0_i32, %c0_i32_0 : i32, i32
  }
  func.func @transform_5(%arg0: i32) -> (i32, i32) {
    %c0_i32 = arith.constant 0 : i32
    %c0_i32_0 = arith.constant 0 : i32
    return %arg0, %c0_i32 : i32, i32
  }
}

</mosaic_0001>

<bundles_post_ra>
// kernel: tpu_custom_call.1
= control target key start
LH: loop header
LB: loop body
LE: loop exit
PB: predicated region body
PF: predicated region fallthrough
CT: control target
= control target key end

     0   :  { %10 = vsyncpa [#allocation3], 0  ;;  %s800_s0 = inlined_call_operand.hbm [shape: f32[4,128], index: 0, kind: input, shape index: {}]   ;;  %s801_s1 = inlined_call_operand.hbm [shape: bf16[128,256], index: 1, kind: input, shape index: {}]   ;;  %s802_s2 = inlined_call_operand.vmem [shape: f32[1,256], index: 2, kind: input, shape index: {}]   ;;  %s803_s3 = inlined_call_operand.hbm [shape: bf16[256,256], index: 3, kind: input, shape index: {}]   ;;  %s804_s4 = inlined_call_operand.vmem [shape: f32[1,256], index: 4, kind: input, shape index: {}]   ;;  %s805_s5 = inlined_call_operand.hbm [shape: f32[4,256], index: 5, kind: output, shape index: {}]  }
   0x1   :  { %11 = vsyncpa [#allocation6], 0 }
   0x2   :  { %12 = vsyncpa [#allocation4], 0  ;;  %s703_s18 = smov [#allocation5]   ;;  %s609_s22 = scalar_lea.hbm %s801_s1, 2048 }
   0x3   :  { %s28_s19 = sshll.u32 %s703_s18, 4  ;;  %p610_p0 = scmp.ne.s32.totalorder %s801_s1, %s609_s22  ;;  %s29_s19 = int_to_ptr.vmem [resolvable:$true] %s28_s19 }
   0x4   :  { %p613_p1 = scmp.lt.u32.totalorder %s609_s22, %s801_s1 }
   0x6   :  { %p615_p2 = pnand %p613_p1, %p610_p0 }
   0x8   :  { %618 = shalt.err (!%p615_p2)
}
   0x9   :  { %s619_s27 = scalar_lea.vmem %s29_s19, 2048  ;;  %p624_p4 = scmp.lt.s32.totalorder %s29_s19, %s29_s19 }
   0xa   :  { %p620_p3 = scmp.ne.s32.totalorder %s29_s19, %s619_s27  ;;  %p625_p5 = scmp.lt.s32.totalorder %s619_s27, %s619_s27 }
   0xc   :  { %p626_p6 = por %p625_p5, %p624_p4 }
   0xe   :  { %p627_p7 = pnand %p626_p6, %p620_p3 }
  0x10   :  { %630 = shalt.err (!%p627_p7)
}
  0x11   :  { %s704_s28 = smov 128   ;;  %s705_s29 = smov 8  }
  0x12   :  { %34 = dma.hbm_to_vmem [thread:$0]  %s801_s1, 2048, %s29_s19, [#allocation6], %s704_s28, %s704_s28, %s705_s29  }
  0x13   :  { %s706_s7 = smov [#allocation2]   ;;  %s707_s9 = smov [#allocation7]  }
  0x14   :  { %s19_s8 = sshll.u32 %s706_s7, 4  ;;  %s42_s10 = sshll.u32 %s707_s9, 4  ;;  %s20_s8 = int_to_ptr.vmem [resolvable:$true] %s19_s8  ;;  %s43_s10 = int_to_ptr.vmem [resolvable:$true] %s42_s10 }
  0x15   :  { %s631_s13 = scalar_lea.hbm %s800_s0, 64 }
  0x16   :  { %p632_p8 = scmp.ne.s32.totalorder %s800_s0, %s631_s13  ;;  %p635_p9 = scmp.lt.u32.totalorder %s631_s13, %s800_s0 }
  0x18   :  { %p637_p10 = pnand %p635_p9, %p632_p8 }
  0x1a   :  { %640 = shalt.err (!%p637_p10)
}
  0x1b   :  { %s641_s1 = scalar_lea.vmem %s20_s8, 64  ;;  %p646_p12 = scmp.lt.s32.totalorder %s20_s8, %s20_s8 }
  0x1c   :  { %p642_p11 = scmp.ne.s32.totalorder %s20_s8, %s641_s1  ;;  %p647_p13 = scmp.lt.s32.totalorder %s641_s1, %s641_s1 }
  0x1e   :  { %p648_p0 = por %p647_p13, %p646_p12 }
  0x20   :  { %p649_p1 = pnand %p648_p0, %p642_p11 }
  0x22   :  { %652 = shalt.err (!%p649_p1)
}
  0x23   :  { %22 = dma.hbm_to_vmem [thread:$0]  %s800_s0, 64, %s20_s8, [#allocation3]  }
  0x24   :  { %s653_s22 = scalar_lea.hbm %s803_s3, 4096 }
  0x25   :  { %p654_p2 = scmp.ne.s32.totalorder %s803_s3, %s653_s22  ;;  %p657_p3 = scmp.lt.u32.totalorder %s653_s22, %s803_s3 }
  0x27   :  { %p659_p4 = pnand %p657_p3, %p654_p2 }
  0x29   :  { %662 = shalt.err (!%p659_p4)
}
  0x2a   :  { %s663_s27 = scalar_lea.vmem %s43_s10, 4096  ;;  %p668_p6 = scmp.lt.s32.totalorder %s43_s10, %s43_s10 }
  0x2b   :  { %p664_p5 = scmp.ne.s32.totalorder %s43_s10, %s663_s27  ;;  %p669_p7 = scmp.lt.s32.totalorder %s663_s27, %s663_s27 }
  0x2d   :  { %p670_p8 = por %p669_p7, %p668_p6 }
  0x2f   :  { %p671_p9 = pnand %p670_p8, %p664_p5 }
  0x31   :  { %674 = shalt.err (!%p671_p9)
}
  0x32   :  { %48 = dma.hbm_to_vmem [thread:$0]  %s803_s3, 4096, %s43_s10, [#allocation6], %s704_s28, %s704_s28, %s705_s29  }
  0x33   :  { %697 = dma.done.wait [#allocation3], 64  }
  0x34   :  { %698 = vsyncadd [#allocation3], 4294967232 }
  0x35   :  { %699 = dma.done.wait [#allocation6], 6144  }
  0x36   :  { %700 = vsyncadd [#allocation6], 4294961152  ;;  %v708_v0 = vmov 0   ;;  %v537_v1 = vld [vmem:[#allocation5 + $0x4] ss:$8 sps:$4 sm:$0xff]   ;;  %v81_v51 = vlaneseq }
  0x37   :  { %203 = vmatprep.mubr.bf16.mxu0 %v708_v0  ;;  %v539_v2 = vld [vmem:[#allocation5] ss:$8 sps:$4 sm:$0xff]   ;;  %171 = vmatprep.subr.bf16.mxu0 %v537_v1  ;;  %v540_v3 = vld [vmem:[#allocation5 + $0x14] ss:$8 sps:$4 sm:$0xff]   ;;  %v542_v4 = vld [vmem:[#allocation5 + $0x10] ss:$8 sps:$4 sm:$0xff]  }
  0x38   :  { %172 = vmatpush1.bf16.msra.mxu0 %v539_v2  ;;  %v543_v5 = vld [vmem:[#allocation5 + $0x24] ss:$8 sps:$4 sm:$0xff]   ;;  %v545_v6 = vld [vmem:[#allocation5 + $0x20] ss:$8 sps:$4 sm:$0xff]   ;;  %v546_v7 = vld [vmem:[#allocation5 + $0x34] ss:$8 sps:$4 sm:$0xff]  }
  0x39   :  { %173 = vmatprep.subr.bf16.mxu0 %v540_v3  ;;  %v548_v8 = vld [vmem:[#allocation5 + $0x30] ss:$8 sps:$4 sm:$0xff]   ;;  %v549_v9 = vld [vmem:[#allocation5 + $0x44] ss:$8 sps:$4 sm:$0xff]   ;;  %v563_v11 = vld [vmem:[#allocation7] ss:$8 sps:$4 sm:$0xff]  }
  0x3a   :  { %v561_v10 = vld [vmem:[#allocation7 + $0x4] ss:$8 sps:$4 sm:$0xff]   ;;  %v564_v12 = vld [vmem:[#allocation7 + $0x14] ss:$8 sps:$4 sm:$0xff]   ;;  %v551_v13 = vld [vmem:[#allocation5 + $0x40] ss:$8 sps:$4 sm:$0xff]  }
  0x3b   :  { %420 = vmatprep.subr.bf16.mxu1 %v561_v10  ;;  %v566_v14 = vld [vmem:[#allocation7 + $0x10] ss:$8 sps:$4 sm:$0xff]   ;;  %v567_v15 = vld [vmem:[#allocation7 + $0x24] ss:$8 sps:$4 sm:$0xff]   ;;  %v552_v16 = vld [vmem:[#allocation5 + $0x54] ss:$8 sps:$4 sm:$0xff]  }
  0x3c   :  { %174 = vmatpush1.bf16.msra.mxu0 %v542_v4  ;;  %421 = vmatpush1.bf16.msra.mxu1 %v563_v11  ;;  %v554_v17 = vld [vmem:[#allocation5 + $0x50] ss:$8 sps:$4 sm:$0xff]   ;;  %v569_v18 = vld [vmem:[#allocation7 + $0x20] ss:$8 sps:$4 sm:$0xff]   ;;  %v570_v19 = vld [vmem:[#allocation7 + $0x34] ss:$8 sps:$4 sm:$0xff]  }
  0x3d   :  { %175 = vmatprep.subr.bf16.mxu0 %v543_v5  ;;  %422 = vmatprep.subr.bf16.mxu1 %v564_v12  ;;  %v555_v20 = vld [vmem:[#allocation5 + $0x64] ss:$8 sps:$4 sm:$0xff]   ;;  %v557_v21 = vld [vmem:[#allocation5 + $0x60] ss:$8 sps:$4 sm:$0xff]   ;;  %v572_v22 = vld [vmem:[#allocation7 + $0x30] ss:$8 sps:$4 sm:$0xff]  }
  0x3e   :  { %v573_v23 = vld [vmem:[#allocation7 + $0x44] ss:$8 sps:$4 sm:$0xff]   ;;  %v558_v24 = vld [vmem:[#allocation5 + $0x74] ss:$8 sps:$4 sm:$0xff]   ;;  %v560_v25 = vld [vmem:[#allocation5 + $0x70] ss:$8 sps:$4 sm:$0xff]  }
  0x3f   :  { %v61_v26 = vld [vmem:[#allocation2] sm:$0xf]  ;;  %v575_v27 = vld [vmem:[#allocation7 + $0x40] ss:$8 sps:$4 sm:$0xff]   ;;  %v578_v29 = vld [vmem:[#allocation7 + $0x50] ss:$8 sps:$4 sm:$0xff]  }
  0x40   :  { %176 = vmatpush1.bf16.msra.mxu0 %v545_v6  ;;  %423 = vmatpush1.bf16.msra.mxu1 %v566_v14  ;;  %v576_v28 = vld [vmem:[#allocation7 + $0x54] ss:$8 sps:$4 sm:$0xff]   ;;  %v62_v30 = vpack.c.bf16 %v61_v26, %v61_v26  ;;  %v579_v31 = vld [vmem:[#allocation7 + $0x64] ss:$8 sps:$4 sm:$0xff]   ;;  %v581_v32 = vld [vmem:[#allocation7 + $0x60] ss:$8 sps:$4 sm:$0xff]  }
  0x41   :  { %177 = vmatprep.subr.bf16.mxu0 %v546_v7  ;;  %424 = vmatprep.subr.bf16.mxu1 %v567_v15  ;;  %v582_v33 = vld [vmem:[#allocation7 + $0x74] ss:$8 sps:$4 sm:$0xff]   ;;  %v584_v34 = vld [vmem:[#allocation7 + $0x70] ss:$8 sps:$4 sm:$0xff]   ;;  %v585_v35 = vld [vmem:[#allocation7 + $0x84] ss:$8 sps:$4 sm:$0xff]  }
  0x42   :  { %v587_v36 = vld [vmem:[#allocation7 + $0x80] ss:$8 sps:$4 sm:$0xff]   ;;  %v588_v37 = vld [vmem:[#allocation7 + $0x94] ss:$8 sps:$4 sm:$0xff]   ;;  %v590_v38 = vld [vmem:[#allocation7 + $0x90] ss:$8 sps:$4 sm:$0xff]  }
  0x43   :  { %v591_v39 = vld [vmem:[#allocation7 + $0xa4] ss:$8 sps:$4 sm:$0xff]   ;;  %v593_v40 = vld [vmem:[#allocation7 + $0xa0] ss:$8 sps:$4 sm:$0xff]   ;;  %v594_v41 = vld [vmem:[#allocation7 + $0xb4] ss:$8 sps:$4 sm:$0xff]  }
  0x44   :  { %178 = vmatpush1.bf16.msra.mxu0 %v548_v8  ;;  %425 = vmatpush1.bf16.msra.mxu1 %v569_v18  ;;  %v596_v42 = vld [vmem:[#allocation7 + $0xb0] ss:$8 sps:$4 sm:$0xff]   ;;  %v597_v43 = vld [vmem:[#allocation7 + $0xc4] ss:$8 sps:$4 sm:$0xff]   ;;  %v599_v44 = vld [vmem:[#allocation7 + $0xc0] ss:$8 sps:$4 sm:$0xff]  }
  0x45   :  { %179 = vmatprep.subr.bf16.mxu0 %v549_v9  ;;  %426 = vmatprep.subr.bf16.mxu1 %v570_v19  ;;  %v600_v45 = vld [vmem:[#allocation7 + $0xd4] ss:$8 sps:$4 sm:$0xff]   ;;  %v602_v46 = vld [vmem:[#allocation7 + $0xd0] ss:$8 sps:$4 sm:$0xff]   ;;  %v603_v47 = vld [vmem:[#allocation7 + $0xe4] ss:$8 sps:$4 sm:$0xff]  }
  0x46   :  { %v605_v48 = vld [vmem:[#allocation7 + $0xe0] ss:$8 sps:$4 sm:$0xff]   ;;  %v606_v49 = vld [vmem:[#allocation7 + $0xf4] ss:$8 sps:$4 sm:$0xff]   ;;  %v608_v50 = vld [vmem:[#allocation7 + $0xf0] ss:$8 sps:$4 sm:$0xff]  }
  0x47   :  { %v82_v52 = vshrl.u32 %v81_v51, 7  ;;  %v79_v54 = vld [vmem:[%s802_s2] sm:$0x3]  ;;  %s709_s2 = smov [#allocation8]  }
  0x48   :  { %180 = vmatpush1.bf16.msra.mxu0 %v551_v13  ;;  %427 = vmatpush1.bf16.msra.mxu1 %v572_v22  ;;  %v248_v4 = vld [vmem:[%s804_s4] sm:$0x3]  ;;  %s472_s7 = sshll.u32 %s709_s2, 4  ;;  %s473_s7 = int_to_ptr.vmem [resolvable:$true] %s472_s7 }
  0x49   :  { %181 = vmatprep.subr.bf16.mxu0 %v552_v16  ;;  %428 = vmatprep.subr.bf16.mxu1 %v573_v23  ;;  %v83_v53 = vsub.s32 0, %v82_v52  ;;  %v87_v55 = vsub.s32 1, %v82_v52  ;;  %s675_s8 = scalar_lea.vmem %s473_s7, 128  ;;  %p680_p11 = scmp.lt.s32.totalorder %s473_s7, %s473_s7 }
  0x4a   :  { %p676_p10 = scmp.ne.s32.totalorder %s473_s7, %s675_s8  ;;  %p681_p12 = scmp.lt.s32.totalorder %s675_s8, %s675_s8 }
  0x4b   :  { %v84_v56 = vrot.slane %v79_v54, %v83_v53  ;;  %v88_v57 = vrot.slane %v79_v54, %v87_v55  ;;  %v253_v5 = vrot.slane %v248_v4, %v83_v53  ;;  %v257_v6 = vrot.slane %v248_v4, %v87_v55 }
  0x4c   :  { %182 = vmatpush1.bf16.msra.mxu0 %v554_v17  ;;  %429 = vmatpush1.bf16.msra.mxu1 %v575_v27  ;;  %p682_p13 = por %p681_p12, %p680_p11 }
  0x4d   :  { %183 = vmatprep.subr.bf16.mxu0 %v555_v20  ;;  %430 = vmatprep.subr.bf16.mxu1 %v576_v28 }
  0x4e   :  { %p683_p0 = pnand %p682_p13, %p676_p10 }
  0x50   :  { %184 = vmatpush1.bf16.msra.mxu0 %v557_v21  ;;  %431 = vmatpush1.bf16.msra.mxu1 %v578_v29 }
  0x51   :  { %185 = vmatprep.subr.bf16.mxu0 %v558_v24  ;;  %432 = vmatprep.subr.bf16.mxu1 %v579_v31 }
  0x54   :  { %186 = vmatpush1.bf16.msra.mxu0 %v560_v25  ;;  %433 = vmatpush1.bf16.msra.mxu1 %v581_v32 }
  0x55   :  { %434 = vmatprep.subr.bf16.mxu1 %v582_v33 }
  0x57   :  { %204 = vmatmul.mubr.bf16.vlgmr.msra.gmra.mrb[0].mxu0 %v62_v30 }
  0x58   :  { %435 = vmatpush1.bf16.msra.mxu1 %v584_v34 }
  0x59   :  { %436 = vmatprep.subr.bf16.mxu1 %v585_v35 }
  0x5c   :  { %437 = vmatpush1.bf16.msra.mxu1 %v587_v36 }
  0x5d   :  { %438 = vmatprep.subr.bf16.mxu1 %v588_v37 }
  0x60   :  { %439 = vmatpush1.bf16.msra.mxu1 %v590_v38 }
  0x61   :  { %440 = vmatprep.subr.bf16.mxu1 %v591_v39 }
  0x64   :  { %441 = vmatpush1.bf16.msra.mxu1 %v593_v40 }
  0x65   :  { %442 = vmatprep.subr.bf16.mxu1 %v594_v41 }
  0x68   :  { %443 = vmatpush1.bf16.msra.mxu1 %v596_v42 }
  0x69   :  { %444 = vmatprep.subr.bf16.mxu1 %v597_v43 }
  0x6c   :  { %445 = vmatpush1.bf16.msra.mxu1 %v599_v44 }
  0x6d   :  { %446 = vmatprep.subr.bf16.mxu1 %v600_v45 }
  0x70   :  { %447 = vmatpush1.bf16.msra.mxu1 %v602_v46 }
  0x71   :  { %448 = vmatprep.subr.bf16.mxu1 %v603_v47 }
  0x74   :  { %449 = vmatpush1.bf16.msra.mxu1 %v605_v48 }
  0x75   :  { %450 = vmatprep.subr.bf16.mxu1 %v606_v49 }
  0x78   :  { %451 = vmatpush1.bf16.msra.mxu1 %v608_v50 }
 0x12a   :  { %v205_v58 = vpop.f32.mrb[0].mxu0 }
 0x12b   :  { %v206_v59 = vadd.f32 %v205_v58, %v84_v56  ;;  %v207_v60 = vpop.f32.mrb[1].mxu0 }
 0x12c   :  { %v208_v61 = vadd.f32 %v207_v60, %v88_v57  ;;  %v209_v62 = vpop.f32.mrb[2].mxu0 }
 0x12d   :  { %v212_v63 = vmax.f32 %v206_v59, 0.0  ;;  %v210_v0 = vpop.f32.mrb[3].mxu0 }
 0x12e   :  { %v213_v1 = vmax.f32 %v208_v61, 0.0 }
 0x12f   :  { %v214_v3 = vpack.c.bf16 %v212_v63, %v212_v63 }
 0x130   :  { %v215_v2 = vpack.c.bf16 %v213_v1, %v213_v1 }
 0x132   :  { %452 = vmatprep.mubr.bf16.mxu1 %v215_v2 }
 0x133   :  { %453 = vmatmul.mubr.bf16.vlgmr.msra.gmra.mrb[0].mxu1 %v214_v3 }
 0x206   :  { %v454_v7 = vpop.f32.mrb[0].mxu1 }
 0x207   :  { %v455_v8 = vadd.f32 %v454_v7, %v253_v5  ;;  %v456_v9 = vpop.f32.mrb[1].mxu1 }
 0x208   :  { %v457_v10 = vadd.f32 %v456_v9, %v257_v6  ;;  %v458_v11 = vpop.f32.mrb[2].mxu1 }
 0x209   :  { %v459_v12 = vpop.f32.mrb[3].mxu1 }
 0x20a   :  { %v463_v13 = vcombine.low %v455_v8, %v457_v10 }
 0x20c   :  { %465 = vst [vmem:[#allocation8] sm:$0xff] %v463_v13 }
 0x20d   :  { %686 = shalt.err (!%p683_p0)
}
 0x20e   :  { %s687_s10 = scalar_lea.hbm %s805_s5, 128 }
 0x20f   :  { %p688_p1 = scmp.ne.s32.totalorder %s805_s5, %s687_s10  ;;  %p691_p2 = scmp.lt.u32.totalorder %s687_s10, %s805_s5 }
 0x211   :  { %p693_p3 = pnand %p691_p2, %p688_p1 }
 0x213   :  { %696 = shalt.err (!%p693_p3)
}
 0x214   :  { %475 = dma.vmem_to_hbm [thread:$0]  %s473_s7, 128, %s805_s5, [#allocation4]  }
 0x215   :  { %701 = dma.done.wait [#allocation4], 128  }
 0x216   :  { %702 = vsyncadd [#allocation4], 4294967168 }
 0x217   :  { %479 = vsyncpa [#allocation3], 1 }
 0x218   :  { %480 = vsyncpa [#allocation6], 1 }
 0x219   :  { %481 = vsyncpa [#allocation4], 1 }

</bundles_post_ra>
